<compile_context>
chip_gen: v7x
topology: tpu7x:2x2x1
jax: 0.10.0
libtpu: 0.0.40
codegen_flags: <defaults>
</compile_context>

<pallas_src>
import jax
import jax.numpy as jnp
from jax.experimental import pallas as pl
from jax.experimental.pallas import tpu as pltpu

# ---- model dims (from the PyTorch module) ----
NUM_RAW_FEATURES = 13                  # 29 = 13 + 6*(3-1) + 1*(5-1)
EMB_DIM = 29
H1, H2, H3, OUT = 22, 15, 10, 3

CAT2D_COLS = [0, 2, 4, 7, 9, 11]       # 2 categories each, 3-dim embedding
CAT3D_COL = 6                          # 3 categories, 5-dim embedding

# Embedded layout: [e0(3), c1, e2(3), c3, e4(3), c5, e6(5), e7(3), c8, e9(3), c10, e11(3), c12]
# -> row offsets into the (29, 22) W1 matrix for each raw feature.
CONT_COLS_AND_ROWS = [(1, 3), (3, 7), (5, 11), (8, 20), (10, 24), (12, 28)]
CAT2D_COLS_IDX_ROWS = [(0, 0, 0), (2, 1, 4), (4, 2, 8), (7, 3, 17), (9, 4, 21), (11, 5, 25)]
CAT3D_ROW = 12


# --------------------------------------------------------------------------------------
# Kernel: operates on the transposed (features, batch) layout, batch on the lane axis.
# --------------------------------------------------------------------------------------
def _model_kernel(x_ref, wc_ref, d2_ref, d3_ref, b1_ref,
                  w2_ref, b2_ref, w3_ref, b3_ref, w4_ref, b4_ref, o_ref):
    x = x_ref[...]                       # (13, tb)  f32, batch on lanes
    xi = x.astype(jnp.int32)             # truncating cast == torch int(...) for categoricals

    wc = wc_ref[...]                     # (22, 6)  W1 rows of the continuous raw features
    d2 = d2_ref[...]                     # (22, 6)  (emb[1]-emb[0]) @ W1-rows per binary cat
    d3 = d3_ref[...]                     # (22, 2)  (emb[1]-emb[0], emb[2]-emb[0]) @ W1-rows

    # ---- Layer 1 with the embedding folded in: pure VPU, no tiny MXU dots ----
    acc = b1_ref[...]                    # (22, 1): bias + all category-0 contributions
    for j, (c, _) in enumerate(CONT_COLS_AND_ROWS):
        acc = acc + wc[:, j:j + 1] * x[c:c + 1, :]                       # rank-1 update
    for j, (c, _, _) in enumerate(CAT2D_COLS_IDX_ROWS):
        ind = (xi[c:c + 1, :] == 1).astype(jnp.float32)                  # (1, tb)
        acc = acc + d2[:, j:j + 1] * ind
    v3 = xi[CAT3D_COL:CAT3D_COL + 1, :]
    acc = acc + d3[:, 0:1] * (v3 == 1).astype(jnp.float32)
    acc = acc + d3[:, 1:2] * (v3 == 2).astype(jnp.float32)
    h = jnp.maximum(acc, 0.0)                                            # (22, tb)

    # ---- Remaining MLP: pre-transposed weights, batch stays on lanes ----
    h = jnp.maximum(jnp.dot(w2_ref[...], h, preferred_element_type=jnp.float32)
                    + b2_ref[...], 0.0)                                  # (15, tb)
    h = jnp.maximum(jnp.dot(w3_ref[...], h, preferred_element_type=jnp.float32)
                    + b3_ref[...], 0.0)                                  # (10, tb)
    logits = (jnp.dot(w4_ref[...], h, preferred_element_type=jnp.float32)
              + b4_ref[...])                                             # (3, tb)

    # ---- Softmax over the class axis (sublanes); EUP reciprocal instead of a divide ----
    m = jnp.max(logits, axis=0, keepdims=True)                           # (1, tb)
    e = jnp.exp(logits - m)
    s = jnp.sum(e, axis=0, keepdims=True)
    o_ref[...] = e * pl.reciprocal(s, approx=True)                       # (3, tb) lane-dense


# --------------------------------------------------------------------------------------
# Wrapper-side parameter folding (tiny, done once per call; could be cached).
# --------------------------------------------------------------------------------------
def _prepare_params(params):
    """Fold the embedding tables into layer-1 quantities and transpose weights so the
    batch axis maps to TPU lanes inside the kernel."""
    w2d, w3d, w1, b1, w2, b2, w3, b3, w4, b4 = params

    # Continuous raw features: corresponding W1 rows as columns of a (22, 6) matrix.
    wc = jnp.stack([w1[r, :] for _, r in CONT_COLS_AND_ROWS], axis=1)         # (22, 6)

    # Binary categoricals: project each embedding row through its W1 rows -> (22,) vectors.
    p0, p1 = [], []
    for _, idx, r in CAT2D_COLS_IDX_ROWS:
        rows = w1[r:r + 3, :]                                                 # (3, 22)
        p0.append(w2d[0, idx * 3:(idx + 1) * 3] @ rows)
        p1.append(w2d[1, idx * 3:(idx + 1) * 3] @ rows)
    p0 = jnp.stack(p0, axis=1)                                                # (22, 6)
    p1 = jnp.stack(p1, axis=1)
    d2 = p1 - p0                                                              # (22, 6)

    # 3-way categorical feature.
    rows3 = w1[CAT3D_ROW:CAT3D_ROW + 5, :]                                    # (5, 22)
    q0 = w3d[0] @ rows3
    q1 = w3d[1] @ rows3
    q2 = w3d[2] @ rows3
    d3 = jnp.stack([q1 - q0, q2 - q0], axis=1)                                # (22, 2)

    # Category-0 contributions fold into the layer-1 bias.
    b1a = (b1.reshape(-1) + p0.sum(axis=1) + q0).reshape(-1, 1)               # (22, 1)

    return (wc, d2, d3, b1a,
            w2.T, b2.reshape(-1, 1),
            w3.T, b3.reshape(-1, 1),
            w4.T, b4.reshape(-1, 1))


def model_forward(x, params, *, tb=1024):
    """x: (B, 13) float32. Returns (B, 3) softmax probabilities.

    tb is the batch tile (lane width per grid step). Default 1024 keeps per-step overhead
    negligible while staying far below VMEM limits on v5e/v6e/v7x; for very large batches on
    v7x, keep the grid length >= 2 so both TensorCores are used.
    """
    b = x.shape[0]
    prep = _prepare_params(params)

    if b <= tb:
        tb_eff, bp = b, b                          # single step, block == full batch dim
    else:
        tb_eff = max(128, (tb // 128) * 128)       # lane-aligned batch tile
        bp = pl.cdiv(b, tb_eff) * tb_eff

    xt = x.T                                       # (13, B): features on sublanes, batch on lanes
    if bp != b:
        xt = jnp.pad(xt, ((0, 0), (0, bp - b)))    # zero rows are harmless (sliced off below)

    full = lambda a: pl.BlockSpec(a.shape, lambda i: (0, 0))

    out_t = pl.pallas_call(
        _model_kernel,
        out_shape=jax.ShapeDtypeStruct((OUT, bp), jnp.float32),
        grid=(bp // tb_eff,),
        in_specs=[pl.BlockSpec((NUM_RAW_FEATURES, tb_eff), lambda i: (0, i))]
                 + [full(a) for a in prep],
        out_specs=pl.BlockSpec((OUT, tb_eff), lambda i: (0, i)),
        compiler_params=pltpu.CompilerParams(dimension_semantics=("parallel",)),
    )(xt, *prep)

    return out_t[:, :b].T                          # back to (B, 3)


# --------------------------------------------------------------------------------------
# Synthetic parameters + pure-JAX reference (mirrors the torch code exactly).
# --------------------------------------------------------------------------------------
def init_params(key):
    ks = jax.random.split(key, 10)

    def lin(kw, kb, fan_in, fan_out):
        bound = 1.0 / jnp.sqrt(jnp.float32(fan_in))
        w = jax.random.uniform(kw, (fan_in, fan_out), jnp.float32, -bound, bound)
        b = jax.random.uniform(kb, (1, fan_out), jnp.float32, -bound, bound)
        return w, b

    w2d = jax.random.normal(ks[0], (2, len(CAT2D_COLS) * 3), jnp.float32)   # (2, 18)
    w3d = jax.random.normal(ks[1], (3, 5), jnp.float32)                     # (3, 5)
    w1, b1 = lin(ks[2], ks[3], EMB_DIM, H1)
    w2, b2 = lin(ks[4], ks[5], H1, H2)
    w3, b3 = lin(ks[6], ks[7], H2, H3)
    w4, b4 = lin(ks[8], ks[9], H3, OUT)
    return (w2d, w3d, w1, b1, w2, b2, w3, b3, w4, b4)


def reference_forward(x, params):
    w2d, w3d, w1, b1, w2, b2, w3, b3, w4, b4 = params

    def emb2(col, idx):
        return w2d[x[:, col].astype(jnp.int32), idx * 3:(idx + 1) * 3]

    def emb3(col):
        return w3d[x[:, col].astype(jnp.int32), :]

    parts = [
        emb2(0, 0), x[:, 1:2],
        emb2(2, 1), x[:, 3:4],
        emb2(4, 2), x[:, 5:6],
        emb3(6),
        emb2(7, 3), x[:, 8:9],
        emb2(9, 4), x[:, 10:11],
        emb2(11, 5), x[:, 12:13],
    ]
    emb = jnp.concatenate(parts, axis=1)                     # (B, 29)
    h = jnp.maximum(emb @ w1 + b1, 0.0)
    h = jnp.maximum(h @ w2 + b2, 0.0)
    h = jnp.maximum(h @ w3 + b3, 0.0)
    return jax.nn.softmax(h @ w4 + b4, axis=-1)


if __name__ == "__main__":
    key = jax.random.PRNGKey(0)
    k_params, k_cat2, k_cat3, k_cont = jax.random.split(key, 4)
    params = init_params(k_params)

    def make_x(key_cont, key_cat2, key_cat3, b):
        x = jax.random.normal(key_cont, (b, NUM_RAW_FEATURES), jnp.float32)
        cat2 = jax.random.randint(key_cat2, (b, len(CAT2D_COLS)), 0, 2).astype(jnp.float32)
        cat3 = jax.random.randint(key_cat3, (b,), 0, 3).astype(jnp.float32)
        x = x.at[:, jnp.array(CAT2D_COLS)].set(cat2)
        x = x.at[:, CAT3D_COL].set(cat3)
        return x

    # Small-batch check (single grid step, block == full batch dim).
    x_small = make_x(k_cont, k_cat2, k_cat3, 8)
    out = jax.block_until_ready(model_forward(x_small, params))
    ref = reference_forward(x_small, params)
    assert out.shape == (8, OUT)
    # approx reciprocal in the softmax -> tolerance ~1e-3 instead of 1e-5
    assert bool(jnp.allclose(out, ref, atol=2e-3, rtol=2e-3)), \
        float(jnp.max(jnp.abs(out - ref)))

    # Multi-step grid + batch-padding path (B=300, tb=128 -> padded to 384, grid=3).
    ks = jax.random.split(key, 3)
    x_big = make_x(ks[0], ks[1], ks[2], 300)
    out_b = jax.block_until_ready(model_forward(x_big, params, tb=128))
    ref_b = reference_forward(x_big, params)
    assert out_b.shape == (300, OUT)
    assert bool(jnp.allclose(out_b, ref_b, atol=2e-3, rtol=2e-3)), \
        float(jnp.max(jnp.abs(out_b - ref_b)))

    print("KERNEL_OK")
</pallas_src>

<mosaic_0001>
module attributes {stable_mosaic.version = 11 : i64} {
  func.func @_model_kernel(%arg0: i32, %arg1: memref<13x8xf32, #tpu.memory_space<vmem>>, %arg2: memref<22x6xf32, #tpu.memory_space<vmem>>, %arg3: memref<22x6xf32, #tpu.memory_space<vmem>>, %arg4: memref<22x2xf32, #tpu.memory_space<vmem>>, %arg5: memref<22x1xf32, #tpu.memory_space<vmem>>, %arg6: memref<15x22xf32, #tpu.memory_space<vmem>>, %arg7: memref<15x1xf32, #tpu.memory_space<vmem>>, %arg8: memref<10x15xf32, #tpu.memory_space<vmem>>, %arg9: memref<10x1xf32, #tpu.memory_space<vmem>>, %arg10: memref<3x10xf32, #tpu.memory_space<vmem>>, %arg11: memref<3x1xf32, #tpu.memory_space<vmem>>, %arg12: memref<3x8xf32, #tpu.memory_space<vmem>>) attributes {dimension_semantics = [#tpu.dimension_semantics<parallel>], iteration_bounds = array<i64: 1>, scalar_prefetch = 0 : i64, scratch_operands = 0 : i64, tpu.core_type = #tpu.core_type<tc>, window_params = [{transform_indices = @transform_0, window_bounds = array<i64: 13, 8>}, {pipeline_mode = #tpu.pipeline_mode<synchronous>, transform_indices = @transform_1, window_bounds = array<i64: 22, 6>}, {pipeline_mode = #tpu.pipeline_mode<synchronous>, transform_indices = @transform_2, window_bounds = array<i64: 22, 6>}, {pipeline_mode = #tpu.pipeline_mode<synchronous>, transform_indices = @transform_3, window_bounds = array<i64: 22, 2>}, {pipeline_mode = #tpu.pipeline_mode<synchronous>, transform_indices = @transform_4, window_bounds = array<i64: 22, 1>}, {pipeline_mode = #tpu.pipeline_mode<synchronous>, transform_indices = @transform_5, window_bounds = array<i64: 15, 22>}, {pipeline_mode = #tpu.pipeline_mode<synchronous>, transform_indices = @transform_6, window_bounds = array<i64: 15, 1>}, {pipeline_mode = #tpu.pipeline_mode<synchronous>, transform_indices = @transform_7, window_bounds = array<i64: 10, 15>}, {pipeline_mode = #tpu.pipeline_mode<synchronous>, transform_indices = @transform_8, window_bounds = array<i64: 10, 1>}, {pipeline_mode = #tpu.pipeline_mode<synchronous>, transform_indices = @transform_9, window_bounds = array<i64: 3, 10>}, {pipeline_mode = #tpu.pipeline_mode<synchronous>, transform_indices = @transform_10, window_bounds = array<i64: 3, 1>}, {transform_indices = @transform_11, window_bounds = array<i64: 3, 8>}]} {
    %c0 = arith.constant 0 : index
    %c0_0 = arith.constant 0 : index
    %0 = vector.load %arg1[%c0, %c0_0] : memref<13x8xf32, #tpu.memory_space<vmem>>, vector<13x8xf32>
    %1 = arith.fptosi %0 : vector<13x8xf32> to vector<13x8xi32>
    %c0_1 = arith.constant 0 : index
    %c0_2 = arith.constant 0 : index
    %2 = vector.load %arg2[%c0_1, %c0_2] : memref<22x6xf32, #tpu.memory_space<vmem>>, vector<22x6xf32>
    %c0_3 = arith.constant 0 : index
    %c0_4 = arith.constant 0 : index
    %3 = vector.load %arg3[%c0_3, %c0_4] : memref<22x6xf32, #tpu.memory_space<vmem>>, vector<22x6xf32>
    %c0_5 = arith.constant 0 : index
    %c0_6 = arith.constant 0 : index
    %4 = vector.load %arg4[%c0_5, %c0_6] : memref<22x2xf32, #tpu.memory_space<vmem>>, vector<22x2xf32>
    %c0_7 = arith.constant 0 : index
    %c0_8 = arith.constant 0 : index
    %5 = vector.load %arg5[%c0_7, %c0_8] : memref<22x1xf32, #tpu.memory_space<vmem>>, vector<22x1xf32>
    %6 = vector.extract_strided_slice %2 {offsets = [0, 0], sizes = [22, 1], strides = [1, 1]} : vector<22x6xf32> to vector<22x1xf32>
    %7 = vector.extract_strided_slice %0 {offsets = [1, 0], sizes = [1, 8], strides = [1, 1]} : vector<13x8xf32> to vector<1x8xf32>
    %8 = vector.broadcast %6 : vector<22x1xf32> to vector<22x8xf32>
    %9 = vector.broadcast %7 : vector<1x8xf32> to vector<22x8xf32>
    %10 = arith.mulf %8, %9 : vector<22x8xf32>
    %11 = vector.broadcast %5 : vector<22x1xf32> to vector<22x8xf32>
    %12 = arith.addf %11, %10 : vector<22x8xf32>
    %13 = vector.extract_strided_slice %2 {offsets = [0, 1], sizes = [22, 1], strides = [1, 1]} : vector<22x6xf32> to vector<22x1xf32>
    %14 = vector.extract_strided_slice %0 {offsets = [3, 0], sizes = [1, 8], strides = [1, 1]} : vector<13x8xf32> to vector<1x8xf32>
    %15 = vector.broadcast %13 : vector<22x1xf32> to vector<22x8xf32>
    %16 = vector.broadcast %14 : vector<1x8xf32> to vector<22x8xf32>
    %17 = arith.mulf %15, %16 : vector<22x8xf32>
    %18 = arith.addf %12, %17 : vector<22x8xf32>
    %19 = vector.extract_strided_slice %2 {offsets = [0, 2], sizes = [22, 1], strides = [1, 1]} : vector<22x6xf32> to vector<22x1xf32>
    %20 = vector.extract_strided_slice %0 {offsets = [5, 0], sizes = [1, 8], strides = [1, 1]} : vector<13x8xf32> to vector<1x8xf32>
    %21 = vector.broadcast %19 : vector<22x1xf32> to vector<22x8xf32>
    %22 = vector.broadcast %20 : vector<1x8xf32> to vector<22x8xf32>
    %23 = arith.mulf %21, %22 : vector<22x8xf32>
    %24 = arith.addf %18, %23 : vector<22x8xf32>
    %25 = vector.extract_strided_slice %2 {offsets = [0, 3], sizes = [22, 1], strides = [1, 1]} : vector<22x6xf32> to vector<22x1xf32>
    %26 = vector.extract_strided_slice %0 {offsets = [8, 0], sizes = [1, 8], strides = [1, 1]} : vector<13x8xf32> to vector<1x8xf32>
    %27 = vector.broadcast %25 : vector<22x1xf32> to vector<22x8xf32>
    %28 = vector.broadcast %26 : vector<1x8xf32> to vector<22x8xf32>
    %29 = arith.mulf %27, %28 : vector<22x8xf32>
    %30 = arith.addf %24, %29 : vector<22x8xf32>
    %31 = vector.extract_strided_slice %2 {offsets = [0, 4], sizes = [22, 1], strides = [1, 1]} : vector<22x6xf32> to vector<22x1xf32>
    %32 = vector.extract_strided_slice %0 {offsets = [10, 0], sizes = [1, 8], strides = [1, 1]} : vector<13x8xf32> to vector<1x8xf32>
    %33 = vector.broadcast %31 : vector<22x1xf32> to vector<22x8xf32>
    %34 = vector.broadcast %32 : vector<1x8xf32> to vector<22x8xf32>
    %35 = arith.mulf %33, %34 : vector<22x8xf32>
    %36 = arith.addf %30, %35 : vector<22x8xf32>
    %37 = vector.extract_strided_slice %2 {offsets = [0, 5], sizes = [22, 1], strides = [1, 1]} : vector<22x6xf32> to vector<22x1xf32>
    %38 = vector.extract_strided_slice %0 {offsets = [12, 0], sizes = [1, 8], strides = [1, 1]} : vector<13x8xf32> to vector<1x8xf32>
    %39 = vector.broadcast %37 : vector<22x1xf32> to vector<22x8xf32>
    %40 = vector.broadcast %38 : vector<1x8xf32> to vector<22x8xf32>
    %41 = arith.mulf %39, %40 : vector<22x8xf32>
    %42 = arith.addf %36, %41 : vector<22x8xf32>
    %43 = vector.extract_strided_slice %1 {offsets = [0, 0], sizes = [1, 8], strides = [1, 1]} : vector<13x8xi32> to vector<1x8xi32>
    %c1_i32 = arith.constant 1 : i32
    %44 = vector.broadcast %c1_i32 : i32 to vector<1x8xi32>
    %45 = arith.cmpi eq, %43, %44 : vector<1x8xi32>
    %46 = arith.extui %45 : vector<1x8xi1> to vector<1x8xi32>
    %47 = arith.sitofp %46 : vector<1x8xi32> to vector<1x8xf32>
    %48 = vector.extract_strided_slice %3 {offsets = [0, 0], sizes = [22, 1], strides = [1, 1]} : vector<22x6xf32> to vector<22x1xf32>
    %49 = vector.broadcast %48 : vector<22x1xf32> to vector<22x8xf32>
    %50 = vector.broadcast %47 : vector<1x8xf32> to vector<22x8xf32>
    %51 = arith.mulf %49, %50 : vector<22x8xf32>
    %52 = arith.addf %42, %51 : vector<22x8xf32>
    %53 = vector.extract_strided_slice %1 {offsets = [2, 0], sizes = [1, 8], strides = [1, 1]} : vector<13x8xi32> to vector<1x8xi32>
    %c1_i32_9 = arith.constant 1 : i32
    %54 = vector.broadcast %c1_i32_9 : i32 to vector<1x8xi32>
    %55 = arith.cmpi eq, %53, %54 : vector<1x8xi32>
    %56 = arith.extui %55 : vector<1x8xi1> to vector<1x8xi32>
    %57 = arith.sitofp %56 : vector<1x8xi32> to vector<1x8xf32>
    %58 = vector.extract_strided_slice %3 {offsets = [0, 1], sizes = [22, 1], strides = [1, 1]} : vector<22x6xf32> to vector<22x1xf32>
    %59 = vector.broadcast %58 : vector<22x1xf32> to vector<22x8xf32>
    %60 = vector.broadcast %57 : vector<1x8xf32> to vector<22x8xf32>
    %61 = arith.mulf %59, %60 : vector<22x8xf32>
    %62 = arith.addf %52, %61 : vector<22x8xf32>
    %63 = vector.extract_strided_slice %1 {offsets = [4, 0], sizes = [1, 8], strides = [1, 1]} : vector<13x8xi32> to vector<1x8xi32>
    %c1_i32_10 = arith.constant 1 : i32
    %64 = vector.broadcast %c1_i32_10 : i32 to vector<1x8xi32>
    %65 = arith.cmpi eq, %63, %64 : vector<1x8xi32>
    %66 = arith.extui %65 : vector<1x8xi1> to vector<1x8xi32>
    %67 = arith.sitofp %66 : vector<1x8xi32> to vector<1x8xf32>
    %68 = vector.extract_strided_slice %3 {offsets = [0, 2], sizes = [22, 1], strides = [1, 1]} : vector<22x6xf32> to vector<22x1xf32>
    %69 = vector.broadcast %68 : vector<22x1xf32> to vector<22x8xf32>
    %70 = vector.broadcast %67 : vector<1x8xf32> to vector<22x8xf32>
    %71 = arith.mulf %69, %70 : vector<22x8xf32>
    %72 = arith.addf %62, %71 : vector<22x8xf32>
    %73 = vector.extract_strided_slice %1 {offsets = [7, 0], sizes = [1, 8], strides = [1, 1]} : vector<13x8xi32> to vector<1x8xi32>
    %c1_i32_11 = arith.constant 1 : i32
    %74 = vector.broadcast %c1_i32_11 : i32 to vector<1x8xi32>
    %75 = arith.cmpi eq, %73, %74 : vector<1x8xi32>
    %76 = arith.extui %75 : vector<1x8xi1> to vector<1x8xi32>
    %77 = arith.sitofp %76 : vector<1x8xi32> to vector<1x8xf32>
    %78 = vector.extract_strided_slice %3 {offsets = [0, 3], sizes = [22, 1], strides = [1, 1]} : vector<22x6xf32> to vector<22x1xf32>
    %79 = vector.broadcast %78 : vector<22x1xf32> to vector<22x8xf32>
    %80 = vector.broadcast %77 : vector<1x8xf32> to vector<22x8xf32>
    %81 = arith.mulf %79, %80 : vector<22x8xf32>
    %82 = arith.addf %72, %81 : vector<22x8xf32>
    %83 = vector.extract_strided_slice %1 {offsets = [9, 0], sizes = [1, 8], strides = [1, 1]} : vector<13x8xi32> to vector<1x8xi32>
    %c1_i32_12 = arith.constant 1 : i32
    %84 = vector.broadcast %c1_i32_12 : i32 to vector<1x8xi32>
    %85 = arith.cmpi eq, %83, %84 : vector<1x8xi32>
    %86 = arith.extui %85 : vector<1x8xi1> to vector<1x8xi32>
    %87 = arith.sitofp %86 : vector<1x8xi32> to vector<1x8xf32>
    %88 = vector.extract_strided_slice %3 {offsets = [0, 4], sizes = [22, 1], strides = [1, 1]} : vector<22x6xf32> to vector<22x1xf32>
    %89 = vector.broadcast %88 : vector<22x1xf32> to vector<22x8xf32>
    %90 = vector.broadcast %87 : vector<1x8xf32> to vector<22x8xf32>
    %91 = arith.mulf %89, %90 : vector<22x8xf32>
    %92 = arith.addf %82, %91 : vector<22x8xf32>
    %93 = vector.extract_strided_slice %1 {offsets = [11, 0], sizes = [1, 8], strides = [1, 1]} : vector<13x8xi32> to vector<1x8xi32>
    %c1_i32_13 = arith.constant 1 : i32
    %94 = vector.broadcast %c1_i32_13 : i32 to vector<1x8xi32>
    %95 = arith.cmpi eq, %93, %94 : vector<1x8xi32>
    %96 = arith.extui %95 : vector<1x8xi1> to vector<1x8xi32>
    %97 = arith.sitofp %96 : vector<1x8xi32> to vector<1x8xf32>
    %98 = vector.extract_strided_slice %3 {offsets = [0, 5], sizes = [22, 1], strides = [1, 1]} : vector<22x6xf32> to vector<22x1xf32>
    %99 = vector.broadcast %98 : vector<22x1xf32> to vector<22x8xf32>
    %100 = vector.broadcast %97 : vector<1x8xf32> to vector<22x8xf32>
    %101 = arith.mulf %99, %100 : vector<22x8xf32>
    %102 = arith.addf %92, %101 : vector<22x8xf32>
    %103 = vector.extract_strided_slice %1 {offsets = [6, 0], sizes = [1, 8], strides = [1, 1]} : vector<13x8xi32> to vector<1x8xi32>
    %104 = vector.extract_strided_slice %4 {offsets = [0, 0], sizes = [22, 1], strides = [1, 1]} : vector<22x2xf32> to vector<22x1xf32>
    %c1_i32_14 = arith.constant 1 : i32
    %105 = vector.broadcast %c1_i32_14 : i32 to vector<1x8xi32>
    %106 = arith.cmpi eq, %103, %105 : vector<1x8xi32>
    %107 = arith.extui %106 : vector<1x8xi1> to vector<1x8xi32>
    %108 = arith.sitofp %107 : vector<1x8xi32> to vector<1x8xf32>
    %109 = vector.broadcast %104 : vector<22x1xf32> to vector<22x8xf32>
    %110 = vector.broadcast %108 : vector<1x8xf32> to vector<22x8xf32>
    %111 = arith.mulf %109, %110 : vector<22x8xf32>
    %112 = arith.addf %102, %111 : vector<22x8xf32>
    %113 = vector.extract_strided_slice %4 {offsets = [0, 1], sizes = [22, 1], strides = [1, 1]} : vector<22x2xf32> to vector<22x1xf32>
    %c2_i32 = arith.constant 2 : i32
    %114 = vector.broadcast %c2_i32 : i32 to vector<1x8xi32>
    %115 = arith.cmpi eq, %103, %114 : vector<1x8xi32>
    %116 = arith.extui %115 : vector<1x8xi1> to vector<1x8xi32>
    %117 = arith.sitofp %116 : vector<1x8xi32> to vector<1x8xf32>
    %118 = vector.broadcast %113 : vector<22x1xf32> to vector<22x8xf32>
    %119 = vector.broadcast %117 : vector<1x8xf32> to vector<22x8xf32>
    %120 = arith.mulf %118, %119 : vector<22x8xf32>
    %121 = arith.addf %112, %120 : vector<22x8xf32>
    %cst = arith.constant 0.000000e+00 : f32
    %122 = vector.broadcast %cst : f32 to vector<22x8xf32>
    %123 = arith.maximumf %121, %122 : vector<22x8xf32>
    %c0_15 = arith.constant 0 : index
    %c0_16 = arith.constant 0 : index
    %124 = vector.load %arg6[%c0_15, %c0_16] : memref<15x22xf32, #tpu.memory_space<vmem>>, vector<15x22xf32>
    %cst_17 = arith.constant dense<0.000000e+00> : vector<15x8xf32>
    %125 = tpu.matmul %124, %123, %cst_17 {dimension_numbers = #tpu.dot_dimension_numbers<[1], [0], [0], [1], [0, 0, 1, 1], [], []>} : vector<15x22xf32>, vector<22x8xf32>, vector<15x8xf32> -> vector<15x8xf32>
    %c0_18 = arith.constant 0 : index
    %c0_19 = arith.constant 0 : index
    %126 = vector.load %arg7[%c0_18, %c0_19] : memref<15x1xf32, #tpu.memory_space<vmem>>, vector<15x1xf32>
    %127 = vector.broadcast %126 : vector<15x1xf32> to vector<15x8xf32>
    %128 = arith.addf %125, %127 : vector<15x8xf32>
    %cst_20 = arith.constant 0.000000e+00 : f32
    %129 = vector.broadcast %cst_20 : f32 to vector<15x8xf32>
    %130 = arith.maximumf %128, %129 : vector<15x8xf32>
    %c0_21 = arith.constant 0 : index
    %c0_22 = arith.constant 0 : index
    %131 = vector.load %arg8[%c0_21, %c0_22] : memref<10x15xf32, #tpu.memory_space<vmem>>, vector<10x15xf32>
    %cst_23 = arith.constant dense<0.000000e+00> : vector<10x8xf32>
    %132 = tpu.matmul %131, %130, %cst_23 {dimension_numbers = #tpu.dot_dimension_numbers<[1], [0], [0], [1], [0, 0, 1, 1], [], []>} : vector<10x15xf32>, vector<15x8xf32>, vector<10x8xf32> -> vector<10x8xf32>
    %c0_24 = arith.constant 0 : index
    %c0_25 = arith.constant 0 : index
    %133 = vector.load %arg9[%c0_24, %c0_25] : memref<10x1xf32, #tpu.memory_space<vmem>>, vector<10x1xf32>
    %134 = vector.broadcast %133 : vector<10x1xf32> to vector<10x8xf32>
    %135 = arith.addf %132, %134 : vector<10x8xf32>
    %cst_26 = arith.constant 0.000000e+00 : f32
    %136 = vector.broadcast %cst_26 : f32 to vector<10x8xf32>
    %137 = arith.maximumf %135, %136 : vector<10x8xf32>
    %c0_27 = arith.constant 0 : index
    %c0_28 = arith.constant 0 : index
    %138 = vector.load %arg10[%c0_27, %c0_28] : memref<3x10xf32, #tpu.memory_space<vmem>>, vector<3x10xf32>
    %cst_29 = arith.constant dense<0.000000e+00> : vector<3x8xf32>
    %139 = tpu.matmul %138, %137, %cst_29 {dimension_numbers = #tpu.dot_dimension_numbers<[1], [0], [0], [1], [0, 0, 1, 1], [], []>} : vector<3x10xf32>, vector<10x8xf32>, vector<3x8xf32> -> vector<3x8xf32>
    %c0_30 = arith.constant 0 : index
    %c0_31 = arith.constant 0 : index
    %140 = vector.load %arg11[%c0_30, %c0_31] : memref<3x1xf32, #tpu.memory_space<vmem>>, vector<3x1xf32>
    %141 = vector.broadcast %140 : vector<3x1xf32> to vector<3x8xf32>
    %142 = arith.addf %139, %141 : vector<3x8xf32>
    %cst_32 = arith.constant dense<0xFF800000> : vector<8xf32>
    %143 = vector.multi_reduction <maximumf>, %142, %cst_32 [0] : vector<3x8xf32> to vector<8xf32>
    %144 = vector.shape_cast %143 : vector<8xf32> to vector<1x8xf32>
    %145 = vector.broadcast %144 : vector<1x8xf32> to vector<3x8xf32>
    %146 = arith.subf %142, %145 : vector<3x8xf32>
    %147 = math.exp %146 : vector<3x8xf32>
    %cst_33 = arith.constant dense<0.000000e+00> : vector<8xf32>
    %148 = vector.multi_reduction <add>, %147, %cst_33 [0] : vector<3x8xf32> to vector<8xf32>
    %149 = vector.shape_cast %148 : vector<8xf32> to vector<1x8xf32>
    %150 = tpu.reciprocal %149 {approx = true} : vector<1x8xf32> -> vector<1x8xf32>
    %151 = vector.broadcast %150 : vector<1x8xf32> to vector<3x8xf32>
    %152 = arith.mulf %147, %151 : vector<3x8xf32>
    %c0_34 = arith.constant 0 : index
    %c0_35 = arith.constant 0 : index
    %153 = vector.load %arg12[%c0_34, %c0_35] : memref<3x8xf32, #tpu.memory_space<vmem>>, vector<3x8xf32>
    tpu.vector_store %arg12[%c0_34, %c0_35], %152 {strides = array<i32>} : memref<3x8xf32, #tpu.memory_space<vmem>>, vector<3x8xf32>,
    return
  }
  func.func @transform_0(%arg0: i32) -> (i32, i32) {
    %c0_i32 = arith.constant 0 : i32
    %c0_i32_0 = arith.constant 0 : i32
    return %c0_i32, %arg0 : i32, i32
  }
  func.func @transform_1(%arg0: i32) -> (i32, i32) {
    %c0_i32 = arith.constant 0 : i32
    %c0_i32_0 = arith.constant 0 : i32
    %c0_i32_1 = arith.constant 0 : i32
    return %c0_i32, %c0_i32_0 : i32, i32
  }
  func.func @transform_2(%arg0: i32) -> (i32, i32) {
    %c0_i32 = arith.constant 0 : i32
    %c0_i32_0 = arith.constant 0 : i32
    %c0_i32_1 = arith.constant 0 : i32
    return %c0_i32, %c0_i32_0 : i32, i32
  }
  func.func @transform_3(%arg0: i32) -> (i32, i32) {
    %c0_i32 = arith.constant 0 : i32
    %c0_i32_0 = arith.constant 0 : i32
    %c0_i32_1 = arith.constant 0 : i32
    return %c0_i32, %c0_i32_0 : i32, i32
  }
  func.func @transform_4(%arg0: i32) -> (i32, i32) {
    %c0_i32 = arith.constant 0 : i32
    %c0_i32_0 = arith.constant 0 : i32
    %c0_i32_1 = arith.constant 0 : i32
    return %c0_i32, %c0_i32_0 : i32, i32
  }
  func.func @transform_5(%arg0: i32) -> (i32, i32) {
    %c0_i32 = arith.constant 0 : i32
    %c0_i32_0 = arith.constant 0 : i32
    %c0_i32_1 = arith.constant 0 : i32
    return %c0_i32, %c0_i32_0 : i32, i32
  }
  func.func @transform_6(%arg0: i32) -> (i32, i32) {
    %c0_i32 = arith.constant 0 : i32
    %c0_i32_0 = arith.constant 0 : i32
    %c0_i32_1 = arith.constant 0 : i32
    return %c0_i32, %c0_i32_0 : i32, i32
  }
  func.func @transform_7(%arg0: i32) -> (i32, i32) {
    %c0_i32 = arith.constant 0 : i32
    %c0_i32_0 = arith.constant 0 : i32
    %c0_i32_1 = arith.constant 0 : i32
    return %c0_i32, %c0_i32_0 : i32, i32
  }
  func.func @transform_8(%arg0: i32) -> (i32, i32) {
    %c0_i32 = arith.constant 0 : i32
    %c0_i32_0 = arith.constant 0 : i32
    %c0_i32_1 = arith.constant 0 : i32
    return %c0_i32, %c0_i32_0 : i32, i32
  }
  func.func @transform_9(%arg0: i32) -> (i32, i32) {
    %c0_i32 = arith.constant 0 : i32
    %c0_i32_0 = arith.constant 0 : i32
    %c0_i32_1 = arith.constant 0 : i32
    return %c0_i32, %c0_i32_0 : i32, i32
  }
  func.func @transform_10(%arg0: i32) -> (i32, i32) {
    %c0_i32 = arith.constant 0 : i32
    %c0_i32_0 = arith.constant 0 : i32
    %c0_i32_1 = arith.constant 0 : i32
    return %c0_i32, %c0_i32_0 : i32, i32
  }
  func.func @transform_11(%arg0: i32) -> (i32, i32) {
    %c0_i32 = arith.constant 0 : i32
    %c0_i32_0 = arith.constant 0 : i32
    return %c0_i32, %arg0 : i32, i32
  }
}

</mosaic_0001>

<bundles_post_ra>
// kernel: tpu_custom_call.1
= control target key start
LH: loop header
LB: loop body
LE: loop exit
PB: predicated region body
PF: predicated region fallthrough
CT: control target
= control target key end

     0   :  { %v864_v2 = vmov 0   ;;  %s1161_s0 = inlined_call_operand.vmem [shape: f32[13,8], index: 0, kind: input, shape index: {}]   ;;  %s1162_s1 = inlined_call_operand.vmem [shape: f32[22,6], index: 1, kind: input, shape index: {}]   ;;  %s1163_s2 = inlined_call_operand.vmem [shape: f32[22,6], index: 2, kind: input, shape index: {}]   ;;  %s1164_s3 = inlined_call_operand.vmem [shape: f32[22,2], index: 3, kind: input, shape index: {}]   ;;  %s1165_s4 = inlined_call_operand.vmem [shape: f32[22,1], index: 4, kind: input, shape index: {}]   ;;  %s1166_s5 = inlined_call_operand.vmem [shape: f32[15,22], index: 5, kind: input, shape index: {}]   ;;  %s1167_s6 = inlined_call_operand.vmem [shape: f32[15,1], index: 6, kind: input, shape index: {}]   ;;  %s1168_s7 = inlined_call_operand.vmem [shape: f32[10,15], index: 7, kind: input, shape index: {}]   ;;  %s1169_s8 = inlined_call_operand.vmem [shape: f32[10,1], index: 8, kind: input, shape index: {}]   ;;  %s1170_s9 = inlined_call_operand.vmem [shape: f32[3,10], index: 9, kind: input, shape index: {}]   ;;  %s1171_s10 = inlined_call_operand.vmem [shape: f32[3,1], index: 10, kind: input, shape index: {}]   ;;  %s1172_s11 = inlined_call_operand.hbm [shape: f32[3,8], index: 11, kind: output, shape index: {}]  }
   0x1   :  { %v52_v0 = vld [vmem:[%s1165_s4] sm:$0xff]  ;;  %799 = vset.pattern.permute.xlu1 %v864_v2  ;;  %798 = vset.pattern.permute.xlu0 %v864_v2  ;;  %v53_v3 = vld [vmem:[%s1165_s4 + $0x8] sm:$0xff] }
   0x2   :  { %v43_v1 = vld [vmem:[%s1162_s1] sm:$0xff]  ;;  %79 = vperm.xlu1 %799, %v52_v0   ;;  %v44_v4 = vld [vmem:[%s1162_s1 + $0x8] sm:$0xff] }
   0x3   :  { %57 = vperm.xlu0 %798, %v43_v1  }
   0x4   :  { %16 = vsyncpa [#allocation3], 0  ;;  %v865_v5 = vmov 1   ;;  %v46_v6 = vld [vmem:[%s1163_s2] sm:$0xff]  ;;  %v866_v7 = vmov 2   ;;  %v867_v9 = vmov 3   ;;  %v70_v20 = vlaneseq }
   0x5   :  { %v45_v8 = vld [vmem:[%s1162_s1 + $0x10] sm:$0x3f]  ;;  %v868_v11 = vmov 4   ;;  %v869_v12 = vmov 5   ;;  %v49_v13 = vld [vmem:[%s1164_s3] sm:$0xff]  ;;  %v47_v14 = vld [vmem:[%s1163_s2 + $0x8] sm:$0xff] }
   0x6   :  { %84 = vperm.xlu1 %799, %v53_v3   ;;  %v54_v10 = vld [vmem:[%s1165_s4 + $0x10] sm:$0x3f]  ;;  %v402_v16 = vld [vmem:[%s1167_s6 + $0x8] sm:$0x7f]  ;;  %v1006_v21 = vshrl.u32 %v70_v20, 7  ;;  %v1012_v25 = vld [vmem:[%s1161_s0] sm:$0xff] }
   0x7   :  { %62 = vperm.xlu0 %798, %v44_v4   ;;  %v51_v15 = vld [vmem:[%s1164_s3 + $0x10] sm:$0x3f]  ;;  %v504_v17 = vld [vmem:[%s1169_s8 + $0x8] sm:$0x3]  ;;  %v399_v48 = vld [vmem:[%s1166_s5] sm:$0xff]  ;;  %vm413_vm0 = vcmask 179200  }
   0x8   :  { %v48_v18 = vld [vmem:[%s1163_s2 + $0x10] sm:$0x3f]  ;;  %v50_v19 = vld [vmem:[%s1164_s3 + $0x8] sm:$0xff]  ;;  %v72_v23 = vsub.s32 1, %v1006_v21  ;;  %v109_v26 = vsub.s32 3, %v1006_v21  ;;  %v131_v32 = vsub.s32 5, %v1006_v21  ;;  %752 = vmatprep.mubr.msk.f32.mxu0 %vm413_vm0, %v399_v48 }
   0x9   :  { %v153_v46 = vsub.s32 0, %v1006_v21  ;;  %v40_v47 = vld [vmem:[%s1161_s0 + $0x8] sm:$0x1f]  ;;  %v401_v50 = vld [vmem:[%s1167_s6] sm:$0xff]  ;;  %vm420_vm4 = vcmask 1045504   ;;  %vm515_vm5 = vcmask 121856  }
   0xa   :  { %801 = vset.pattern.permute.xlu1 %v865_v5  ;;  %v73_v27 = vrot.slane %v1012_v25, %v72_v23  ;;  %v1023_v31 = vrot.slane %v1012_v25, %v109_v26  ;;  %v1030_v39 = vrot.slane %v1012_v25, %v131_v32  ;;  %v503_v52 = vld [vmem:[%s1169_s8] sm:$0xff]  ;;  %v785_v32 = vtrunc.f32 %v40_v47 }
   0xb   :  { %800 = vset.pattern.permute.xlu0 %v865_v5  ;;  %100 = vperm.xlu1 %801, %v44_v4   ;;  %v1047_v51 = vrot.slane %v40_v47, %v153_v46  ;;  %v604_v55 = vld [vmem:[%s1171_s10] sm:$0x7]  ;;  %vm522_vm6 = vcmask 1046528   ;;  %vm871_vm7 = vmmov 1   ;;  %vm873_vm9 = vmmov 0  }
   0xc   :  { %96 = vperm.xlu0 %800, %v43_v1   ;;  %vm774_vm8 = vmpackc.low %vm522_vm6, %vm871_vm7  ;;  %vm614_vm10 = vcmask 1041408   ;;  %vm610_vm12 = vcmask 80896   ;;  %vm688_vm13 = vcmask 59392  }
   0xd   :  { %vm781_vm11 = vmpackc.low %vm614_vm10, %vm871_vm7 }
   0xf   :  { %802 = vset.pattern.permute.xlu1 %v866_v7 }
  0x10   :  { %234 = vperm.xlu0 %800, %v46_v6   ;;  %118 = vperm.xlu1 %802, %v43_v1  }
  0x14   :  { %813 = vset.pattern.permute.xlu0 %v866_v7  ;;  %803 = vset.pattern.permute.xlu1 %v864_v2 }
  0x15   :  { %122 = vperm.xlu0 %813, %v44_v4   ;;  %67 = vperm.xlu1 %803, %v45_v8  }
  0x19   :  { %256 = vperm.xlu0 %813, %v46_v6   ;;  %804 = vset.pattern.permute.xlu1 %v867_v9 }
  0x1a   :  { %140 = vperm.xlu1 %804, %v43_v1  }
  0x1d   :  { %816 = vset.pattern.permute.xlu0 %v867_v9 }
  0x1e   :  { %144 = vperm.xlu0 %816, %v44_v4   ;;  %805 = vset.pattern.permute.xlu1 %v864_v2 }
  0x1f   :  { %89 = vperm.xlu1 %805, %v54_v10  }
  0x22   :  { %278 = vperm.xlu0 %816, %v46_v6  }
  0x23   :  { %806 = vset.pattern.permute.xlu1 %v865_v5 }
  0x24   :  { %104 = vperm.xlu1 %806, %v45_v8  }
  0x26   :  { %819 = vset.pattern.permute.xlu0 %v868_v11 }
  0x27   :  { %162 = vperm.xlu0 %819, %v43_v1  }
  0x28   :  { %807 = vset.pattern.permute.xlu1 %v868_v11 }
  0x29   :  { %166 = vperm.xlu1 %807, %v44_v4  }
  0x2b   :  { %303 = vperm.xlu0 %819, %v46_v6  }
  0x2d   :  { %808 = vset.pattern.permute.xlu1 %v866_v7 }
  0x2e   :  { %126 = vperm.xlu1 %808, %v45_v8  }
  0x2f   :  { %822 = vset.pattern.permute.xlu0 %v869_v12 }
  0x30   :  { %184 = vperm.xlu0 %822, %v43_v1  }
  0x32   :  { %809 = vset.pattern.permute.xlu1 %v869_v12 }
  0x33   :  { %188 = vperm.xlu1 %809, %v44_v4  }
  0x34   :  { %325 = vperm.xlu0 %822, %v46_v6  }
  0x37   :  { %810 = vset.pattern.permute.xlu1 %v867_v9 }
  0x38   :  { %825 = vset.pattern.permute.xlu0 %v864_v2  ;;  %148 = vperm.xlu1 %810, %v45_v8  }
  0x39   :  { %210 = vperm.xlu0 %825, %v46_v6  }
  0x3c   :  { %811 = vset.pattern.permute.xlu1 %v864_v2 }
  0x3d   :  { %348 = vperm.xlu0 %825, %v49_v13   ;;  %215 = vperm.xlu1 %811, %v47_v14  }
  0x41   :  { %830 = vset.pattern.permute.xlu0 %v865_v5  ;;  %812 = vset.pattern.permute.xlu1 %v868_v11 }
  0x42   :  { %375 = vperm.xlu0 %830, %v49_v13   ;;  %170 = vperm.xlu1 %812, %v45_v8   ;;  %v783_v13 = vtrunc.f32 %v1012_v25 }
  0x46   :  { %833 = vset.pattern.permute.xlu0 %v864_v2  ;;  %814 = vset.pattern.permute.xlu1 %v865_v5 }
  0x47   :  { %358 = vperm.xlu0 %833, %v51_v15   ;;  %238 = vperm.xlu1 %814, %v47_v14  }
  0x4b   :  { %410 = vperm.xlu0 %833, %v402_v16   ;;  %815 = vset.pattern.permute.xlu1 %v869_v12 }
  0x4c   :  { %192 = vperm.xlu1 %815, %v45_v8  }
  0x4f   :  { %512 = vperm.xlu0 %833, %v504_v17   ;;  %v175_v17 = vsub.s32 2, %v1006_v21 }
  0x50   :  { %817 = vset.pattern.permute.xlu1 %v866_v7 }
  0x51   :  { %260 = vperm.xlu1 %817, %v47_v14  }
  0x55   :  { %818 = vset.pattern.permute.xlu1 %v864_v2 }
  0x56   :  { %220 = vperm.xlu1 %818, %v48_v18  }
  0x5a   :  { %820 = vset.pattern.permute.xlu1 %v867_v9 }
  0x5b   :  { %282 = vperm.xlu1 %820, %v47_v14  }
  0x5f   :  { %821 = vset.pattern.permute.xlu1 %v865_v5 }
  0x60   :  { %242 = vperm.xlu1 %821, %v48_v18  }
  0x64   :  { %823 = vset.pattern.permute.xlu1 %v868_v11 }
  0x65   :  { %307 = vperm.xlu1 %823, %v47_v14  }
  0x69   :  { %824 = vset.pattern.permute.xlu1 %v866_v7 }
  0x6a   :  { %264 = vperm.xlu1 %824, %v48_v18  }
  0x6e   :  { %826 = vset.pattern.permute.xlu1 %v869_v12 }
  0x6f   :  { %329 = vperm.xlu1 %826, %v47_v14  }
  0x73   :  { %827 = vset.pattern.permute.xlu1 %v867_v9 }
  0x74   :  { %286 = vperm.xlu1 %827, %v48_v18  }
  0x78   :  { %828 = vset.pattern.permute.xlu1 %v864_v2 }
  0x79   :  { %353 = vperm.xlu1 %828, %v50_v19  }
  0x7d   :  { %829 = vset.pattern.permute.xlu1 %v868_v11 }
  0x7e   :  { %311 = vperm.xlu1 %829, %v48_v18  }
  0x81   :  { %v80_v22 = vpop.permute.xlu1 %79 }
  0x82   :  { %v58_v24 = vpop.permute.xlu0 %57  ;;  %831 = vset.pattern.permute.xlu1 %v865_v5 }
  0x83   :  { %379 = vperm.xlu1 %831, %v50_v19   ;;  %v74_v33 = vmul.f32 %v73_v27, %v58_v24  ;;  %v870_v24 = vmov 0.0  }
  0x85   :  { %v85_v28 = vpop.permute.xlu1 %84  ;;  %v92_v41 = vadd.f32 %v80_v22, %v74_v33  ;;  %v176_v22 = vrot.slane %v40_v47, %v175_v17 }
  0x86   :  { %v63_v29 = vpop.permute.xlu0 %62 }
  0x87   :  { %v75_v30 = vmul.f32 %v73_v27, %v63_v29  ;;  %832 = vset.pattern.permute.xlu1 %v869_v12 }
  0x88   :  { %333 = vperm.xlu1 %832, %v48_v18   ;;  %v197_v18 = vsub.s32 4, %v1006_v21 }
  0x89   :  { %v93_v36 = vadd.f32 %v85_v28, %v75_v30 }
  0x8a   :  { %v101_v34 = vpop.permute.xlu1 %100  ;;  %v198_v28 = vrot.slane %v40_v47, %v197_v18 }
  0x8b   :  { %v97_v35 = vpop.permute.xlu0 %96  ;;  %v112_v37 = vmul.f32 %v1023_v31, %v101_v34 }
  0x8c   :  { %v111_v38 = vmul.f32 %v1023_v31, %v97_v35  ;;  %834 = vset.pattern.permute.xlu1 %v865_v5 }
  0x8d   :  { %v1032_v40 = vadd.f32 %v112_v37, %v93_v36  ;;  %383 = vperm.xlu1 %834, %v51_v15   ;;  %v784_v15 = vcvt.f32.s32 %v783_v13 }
  0x8e   :  { %v114_v43 = vadd.f32 %v111_v38, %v92_v41  ;;  %v786_v38 = vcvt.f32.s32 %v785_v32 }
  0x8f   :  { %v119_v42 = vpop.permute.xlu1 %118  ;;  %v235_v62 = vpop.permute.xlu0 %234  ;;  %vm205_vm1 = vcmp.eq.s32.totalorder %v784_v15, 1  ;;  %vm371_vm3 = vcmp.eq.s32.totalorder %v784_v15, 2 }
  0x90   :  { %v133_v44 = vmul.f32 %v1030_v39, %v119_v42  ;;  %vm299_vm2 = vcmp.eq.s32.totalorder %v786_v38, 1 }
  0x91   :  { %835 = vset.pattern.permute.xlu1 %v864_v2 }
  0x92   :  { %v136_v45 = vadd.f32 %v133_v44, %v114_v43  ;;  %405 = vperm.xlu1 %835, %v401_v50   ;;  %v291_v43 = vsub.s32 7, %v1006_v21 }
  0x94   :  { %v68_v49 = vpop.permute.xlu1 %67  ;;  %v123_v0 = vpop.permute.xlu0 %122 }
  0x95   :  { %v76_v57 = vmul.f32 %v73_v27, %v68_v49  ;;  %v723_v27 = vsel %vm205_vm1, 1.0, %v870_v24  ;;  %v134_v49 = vmul.f32 %v1030_v39, %v123_v0 }
  0x96   :  { %507 = vperm.xlu1 %835, %v503_v52   ;;  %v1074_v30 = vrot.slane %v723_v27, %v153_v46  ;;  %v1078_v35 = vrot.slane %v723_v27, %v175_v17  ;;  %v1085_v47 = vrot.slane %v723_v27, %v291_v43  ;;  %v724_v52 = vsel %vm299_vm2, 1.0, %v870_v24 }
  0x98   :  { %v257_v2 = vpop.permute.xlu0 %256  ;;  %v249_v44 = vmul.f32 %v1078_v35, %v235_v62 }
  0x99   :  { %v141_v53 = vpop.permute.xlu1 %140 }
  0x9a   :  { %v155_v54 = vmul.f32 %v1047_v51, %v141_v53  ;;  %607 = vperm.xlu1 %835, %v604_v55   ;;  %v1093_v55 = vrot.slane %v724_v52, %v72_v23 }
  0x9c   :  { %v158_v56 = vadd.f32 %v155_v54, %v136_v45  ;;  %v1083_v45 = vrot.slane %v723_v27, %v197_v18 }
  0x9d   :  { %v145_v4 = vpop.permute.xlu0 %144 }
  0x9e   :  { %v90_v58 = vpop.permute.xlu1 %89  ;;  %v271_v50 = vmul.f32 %v1083_v45, %v257_v2  ;;  %v156_v54 = vmul.f32 %v1047_v51, %v145_v4  ;;  %v363_v4 = vsub.s32 6, %v1006_v21 }
  0x9f   :  { %v1056_v59 = vadd.f32 %v90_v58, %v76_v57  ;;  %v137_v57 = vadd.f32 %v134_v49, %v1032_v40 }
  0xa0   :  { %v364_v15 = vrot.slane %v723_v27, %v363_v4 }
  0xa1   :  { %v279_v7 = vpop.permute.xlu0 %278  ;;  %v159_v13 = vadd.f32 %v156_v54, %v137_v57 }
  0xa2   :  { %v293_v58 = vmul.f32 %v1085_v47, %v279_v7 }
  0xa3   :  { %v105_v60 = vpop.permute.xlu1 %104 }
  0xa4   :  { %v113_v2 = vmul.f32 %v1023_v31, %v105_v60 }
  0xa6   :  { %v163_v9 = vpop.permute.xlu0 %162  ;;  %v116_v60 = vadd.f32 %v113_v2, %v1056_v59 }
  0xa7   :  { %v177_v29 = vmul.f32 %v176_v22, %v163_v9 }
  0xa8   :  { %v167_v61 = vpop.permute.xlu1 %166 }
  0xa9   :  { %v180_v36 = vadd.f32 %v177_v29, %v158_v56  ;;  %v178_v62 = vmul.f32 %v176_v22, %v167_v61  ;;  %v725_v29 = vsel %vm371_vm3, 1.0, %v870_v24 }
  0xaa   :  { %v304_v11 = vpop.permute.xlu0 %303 }
  0xab   :  { %v181_v23 = vadd.f32 %v178_v62, %v159_v13  ;;  %v318_v17 = vmul.f32 %v1093_v55, %v304_v11 }
  0xad   :  { %v1058_v63 = vpop.permute.xlu1 %126 }
  0xae   :  { %v135_v61 = vmul.f32 %v1030_v39, %v1058_v63 }
  0xaf   :  { %v185_v14 = vpop.permute.xlu0 %184 }
  0xb0   :  { %v199_v34 = vmul.f32 %v198_v28, %v185_v14  ;;  %v1100_v14 = vrot.slane %v724_v52, %v109_v26  ;;  %v138_v39 = vadd.f32 %v135_v61, %v116_v60 }
  0xb2   :  { %v189_v1 = vpop.permute.xlu1 %188  ;;  %v202_v42 = vadd.f32 %v199_v34, %v180_v36 }
  0xb3   :  { %v326_v19 = vpop.permute.xlu0 %325  ;;  %v200_v0 = vmul.f32 %v198_v28, %v189_v1 }
  0xb4   :  { %v340_v11 = vmul.f32 %v1100_v14, %v326_v19 }
  0xb5   :  { %v203_v1 = vadd.f32 %v200_v0, %v181_v23 }
  0xb7   :  { %v1060_v3 = vpop.permute.xlu1 %148 }
  0xb8   :  { %v211_v33 = vpop.permute.xlu0 %210  ;;  %v157_v26 = vmul.f32 %v1047_v51, %v1060_v3  ;;  %v389_v51 = vrot.slane %v725_v29, %v363_v4 }
  0xb9   :  { %v227_v37 = vmul.f32 %v1074_v30, %v211_v33 }
  0xba   :  { %v160_v36 = vadd.f32 %v157_v26, %v138_v39  ;;  %v872_v39 = vmov 0.0|0.0  }
  0xbb   :  { %v230_v46 = vadd.f32 %v227_v37, %v202_v42 }
  0xbc   :  { %v216_v5 = vpop.permute.xlu1 %215  ;;  %v349_v21 = vpop.permute.xlu0 %348 }
  0xbd   :  { %v252_v53 = vadd.f32 %v249_v44, %v230_v46  ;;  %v228_v40 = vmul.f32 %v1074_v30, %v216_v5  ;;  %v365_v37 = vmul.f32 %v364_v15, %v349_v21 }
  0xbf   :  { %v274_v9 = vadd.f32 %v271_v50, %v252_v53  ;;  %v231_v5 = vadd.f32 %v228_v40, %v203_v1  ;;  %v400_v1 = vld [vmem:[%s1166_s5 + $0x8] sm:$0x7f] }
  0xc1   :  { %v1062_v6 = vpop.permute.xlu1 %170  ;;  %v296_v18 = vadd.f32 %v293_v58, %v274_v9  ;;  %v376_v43 = vpop.permute.xlu0 %375 }
  0xc2   :  { %v179_v63 = vmul.f32 %v176_v22, %v1062_v6 }
  0xc3   :  { %v321_v32 = vadd.f32 %v318_v17, %v296_v18 }
  0xc4   :  { %v182_v42 = vadd.f32 %v179_v63, %v160_v36 }
  0xc5   :  { %v343_v27 = vadd.f32 %v340_v11, %v321_v32 }
  0xc6   :  { %v239_v8 = vpop.permute.xlu1 %238  ;;  %v359_v2 = vpop.permute.xlu0 %358 }
  0xc7   :  { %v250_v31 = vmul.f32 %v1078_v35, %v239_v8  ;;  %v368_v49 = vadd.f32 %v365_v37, %v343_v27  ;;  %v367_v17 = vmul.f32 %v364_v15, %v359_v2 }
  0xc9   :  { %v253_v34 = vadd.f32 %v250_v31, %v231_v5 }
  0xca   :  { %v411_v31 = vpop.permute.xlu0 %410 }
  0xcb   :  { %v1064_v10 = vpop.permute.xlu1 %192 }
  0xcc   :  { %v201_v3 = vmul.f32 %v198_v28, %v1064_v10  ;;  %v390_v10 = vmul.f32 %v389_v51, %v376_v43 }
  0xce   :  { %v204_v46 = vadd.f32 %v201_v3, %v182_v42  ;;  %v513_v63 = vpop.permute.xlu0 %512 }
  0xd0   :  { %v1066_v12 = vpop.permute.xlu1 %260 }
  0xd1   :  { %v272_v33 = vmul.f32 %v1083_v45, %v1066_v12 }
  0xd3   :  { %v275_v38 = vadd.f32 %v272_v33, %v253_v34  ;;  %v502_v33 = vld [vmem:[%s1168_s7 + $0x8] sm:$0x3] }
  0xd5   :  { %v1069_v16 = vpop.permute.xlu1 %220 }
  0xd6   :  { %v229_v12 = vmul.f32 %v1074_v30, %v1069_v16  ;;  %v393_v30 = vadd.f32 %v390_v10, %v368_v49 }
  0xd8   :  { %v232_v52 = vadd.f32 %v229_v12, %v204_v46 }
  0xda   :  { %v283_v20 = vpop.permute.xlu1 %282 }
  0xdb   :  { %v294_v59 = vmul.f32 %v1085_v47, %v283_v20 }
  0xdd   :  { %v297_v44 = vadd.f32 %v294_v59, %v275_v38  ;;  %v603_v38 = vld [vmem:[%s1170_s9] sm:$0x7]  ;;  %s874_s9 = smov [#allocation2]  }
  0xde   :  { %s715_s15 = sshll.u32 %s874_s9, 4  ;;  %s716_s15 = int_to_ptr.vmem [resolvable:$true] %s715_s15 }
  0xdf   :  { %v1076_v25 = vpop.permute.xlu1 %242  ;;  %s840_s16 = scalar_lea.vmem %s716_s15, 64  ;;  %p845_p1 = scmp.lt.s32.totalorder %s716_s15, %s716_s15 }
  0xe0   :  { %v251_v20 = vmul.f32 %v1078_v35, %v1076_v25  ;;  %v396_v35 = vmax.f32 %v393_v30, 0.0  ;;  %p841_p0 = scmp.ne.s32.totalorder %s716_s15, %s840_s16  ;;  %p846_p2 = scmp.lt.s32.totalorder %s840_s16, %s840_s16 }
  0xe2   :  { %v254_v54 = vadd.f32 %v251_v20, %v232_v52  ;;  %p847_p3 = por %p846_p2, %p845_p1 }
  0xe4   :  { %v308_v41 = vpop.permute.xlu1 %307  ;;  %p848_p4 = pnand %p847_p3, %p841_p0 }
  0xe5   :  { %v319_v19 = vmul.f32 %v1093_v55, %v308_v41 }
  0xe7   :  { %v322_v28 = vadd.f32 %v319_v19, %v297_v44 }
  0xe9   :  { %v265_v48 = vpop.permute.xlu1 %264 }
  0xea   :  { %v273_v41 = vmul.f32 %v1083_v45, %v265_v48 }
  0xec   :  { %v276_v62 = vadd.f32 %v273_v41, %v254_v54 }
  0xee   :  { %v330_v56 = vpop.permute.xlu1 %329 }
  0xef   :  { %v341_v6 = vmul.f32 %v1100_v14, %v330_v56 }
  0xf1   :  { %v344_v53 = vadd.f32 %v341_v6, %v322_v28 }
  0xf3   :  { %v287_v7 = vpop.permute.xlu1 %286 }
  0xf4   :  { %v295_v57 = vmul.f32 %v1085_v47, %v287_v7 }
  0xf6   :  { %v298_v25 = vadd.f32 %v295_v57, %v276_v62 }
  0xf8   :  { %v354_v8 = vpop.permute.xlu1 %353 }
  0xf9   :  { %v366_v50 = vmul.f32 %v364_v15, %v354_v8 }
  0xfb   :  { %v369_v58 = vadd.f32 %v366_v50, %v344_v53 }
  0xfd   :  { %v312_v22 = vpop.permute.xlu1 %311 }
  0xfe   :  { %v320_v9 = vmul.f32 %v1093_v55, %v312_v22 }
 0x100   :  { %v323_v23 = vadd.f32 %v320_v9, %v298_v25 }
 0x102   :  { %v380_v16 = vpop.permute.xlu1 %379 }
 0x103   :  { %v391_v56 = vmul.f32 %v389_v51, %v380_v16 }
 0x105   :  { %v394_v13 = vadd.f32 %v391_v56, %v369_v58 }
 0x107   :  { %v397_v0 = vmax.f32 %v394_v13, 0.0  ;;  %v334_v4 = vpop.permute.xlu1 %333 }
 0x108   :  { %v342_v45 = vmul.f32 %v1100_v14, %v334_v4  ;;  %v501_v14 = vld [vmem:[%s1168_s7] sm:$0xff] }
 0x109   :  { %v769_v48 = vpack.c.bf16 %v397_v0, %v396_v35  ;;  %759 = vmatprep.mubr.msk.f32.mxu1 %vm515_vm5, %v501_v14 }
 0x10a   :  { %v345_v40 = vadd.f32 %v342_v45, %v323_v23 }
 0x10b   :  { %770 = vmatprep.subr.bf16.mxu0 %v769_v48 }
 0x10c   :  { %v384_v47 = vpop.permute.xlu1 %383  ;;  %v370_v18 = vadd.f32 %v367_v17, %v345_v40  ;;  %772 = vmatpush3.bf16.msra.mxu0 %v769_v48 }
 0x10d   :  { %v392_v7 = vmul.f32 %v389_v51, %v384_v47 }
 0x10f   :  { %v395_v61 = vadd.f32 %v392_v7, %v370_v18 }
 0x111   :  { %v398_v55 = vmax.f32 %v395_v61, 0.0  ;;  %v406_v26 = vpop.permute.xlu1 %405 }
 0x113   :  { %750 = vmatprep.subr.msk.mxu0 %vm420_vm4, %v398_v55 }
 0x114   :  { %751 = vmatpush3.msk.msra.mxu0 %vm420_vm4, %v398_v55 }
 0x115   :  { %753 = vmatmul.mubr.msk.f32.vlgmr.msra.gmra.mrb[0].mxu0 %vm413_vm0, %v400_v1  ;;  %v508_v34 = vpop.permute.xlu1 %507 }
 0x1e8   :  { %v754_v60 = vpop.f32.mrb[0].mxu0 }
 0x1e9   :  { %v496_v21 = vadd.f32 %v754_v60, %v411_v31  ;;  %v490_v15 = vpop.f32.mrb[1].mxu0 }
 0x1ea   :  { %v491_v29 = vadd.f32 %v490_v15, %v406_v26 }
 0x1eb   :  { %v500_v11 = vmax.f32 %v496_v21, 0.0 }
 0x1ec   :  { %v499_v5 = vmax.f32 %v491_v29, 0.0 }
 0x1ee   :  { %v773_v32 = vpack.c.bf16 %v500_v11, %v499_v5 }
 0x1f0   :  { %775 = vmatprep.subr.msk.bf16.mxu1 %vm774_vm8, %v773_v32 }
 0x1f1   :  { %778 = vmatpush3.bf16.msk.msra.mxu1 %vm774_vm8, %v773_v32 }
 0x1f2   :  { %779 = vmatprep.subr.bf16.mxu1 %v872_v39 }
 0x1f4   :  { %760 = vmatmul.mubr.msk.f32.vlgmr.msra.gmra.mrb[0].mxu1 %vm515_vm5, %v502_v33 }
 0x1f5   :  { %766 = vmatprep.mubr.msk.f32.mxu1 %vm873_vm9, %v870_v24  ;;  %v608_v24 = vpop.permute.xlu1 %607 }
 0x2c7   :  { %v761_v8 = vpop.f32.mrb[0].mxu1 }
 0x2c8   :  { %v598_v59 = vadd.f32 %v761_v8, %v513_v63  ;;  %v592_v36 = vpop.f32.mrb[1].mxu1 }
 0x2c9   :  { %v593_v51 = vadd.f32 %v592_v36, %v508_v34 }
 0x2ca   :  { %v602_v3 = vmax.f32 %v598_v59, 0.0 }
 0x2cb   :  { %v601_v27 = vmax.f32 %v593_v51, 0.0 }
 0x2cd   :  { %v780_v37 = vpack.c.bf16 %v602_v3, %v601_v27 }
 0x2cf   :  { %782 = vmatpush3.bf16.msk.msra.mxu1 %vm781_vm11, %v780_v37 }
 0x2d2   :  { %767 = vmatmul.mubr.msk.f32.vlgmr.msra.gmra.mrb[2].mxu1 %vm610_vm12, %v603_v38 }
 0x3a5   :  { %v684_v19 = vpop.f32.mrb[2].mxu1 }
 0x3a6   :  { %v685_v42 = vadd.f32 %v684_v19, %v608_v24  ;;  %v768_v43 = vpop.f32.mrb[3].mxu1 }
 0x3a8   :  { %v689_v12 = vsel %vm688_vm13, %v685_v42, -inf }
 0x3a9   :  { %v690_v44 = vrot.slane %v689_v12, 4 }
 0x3ab   :  { %v691_v6 = vmax.f32 %v689_v12, %v690_v44 }
 0x3ad   :  { %v692_v22 = vrot.slane %v691_v6, 2 }
 0x3af   :  { %v693_v46 = vmax.f32 %v691_v6, %v692_v22 }
 0x3b1   :  { %v694_v20 = vrot.slane %v693_v46, 1 }
 0x3b3   :  { %v695_v49 = vmax.f32 %v693_v46, %v694_v20 }
 0x3b5   :  { %v696_v10 = vsub.f32 %v685_v42, %v695_v49 }
 0x3b7   :  { %v697_v28 = vmul.f32 1.442695, %v696_v10 }
 0x3b9   :  { %836 = vpow2.f32 %v697_v28 }
 0x3c3   :  { %v837_v50 = vpop.eup %836 }
 0x3c4   :  { %v699_v52 = vsel %vm688_vm13, %v837_v50, 0.0 }
 0x3c5   :  { %v700_v41 = vrot.slane %v699_v52, 4 }
 0x3c7   :  { %v701_v53 = vadd.f32 %v700_v41, %v699_v52 }
 0x3c9   :  { %v702_v54 = vrot.slane %v701_v53, 2 }
 0x3cb   :  { %v703_v57 = vadd.f32 %v702_v54, %v701_v53 }
 0x3cd   :  { %v704_v16 = vrot.slane %v703_v57, 1 }
 0x3cf   :  { %v705_v30 = vadd.f32 %v704_v16, %v703_v57 }
 0x3d1   :  { %838 = vrcp.f32 %v705_v30 }
 0x3db   :  { %v839_v58 = vpop.eup %838 }
 0x3dc   :  { %v707_v56 = vmul.f32 %v839_v58, %v837_v50 }
 0x3de   :  { %708 = vst.msk [vmem:[#allocation2] sm:$0x7] %vm688_vm13, %v707_v56 }
 0x3df   :  { %851 = shalt.err (!%p848_p4)
}
 0x3e0   :  { %s852_s19 = scalar_lea.hbm %s1172_s11, 64 }
 0x3e1   :  { %p853_p5 = scmp.ne.s32.totalorder %s1172_s11, %s852_s19  ;;  %p856_p6 = scmp.lt.u32.totalorder %s852_s19, %s1172_s11 }
 0x3e3   :  { %p858_p7 = pnand %p856_p6, %p853_p5 }
 0x3e5   :  { %861 = shalt.err (!%p858_p7)
}
 0x3e6   :  { %718 = dma.vmem_to_hbm [thread:$0]  %s716_s15, 64, %s1172_s11, [#allocation3]  }
 0x3e7   :  { %862 = dma.done.wait [#allocation3], 64  }
 0x3e8   :  { %863 = vsyncadd [#allocation3], 4294967232 }
 0x3e9   :  { %722 = vsyncpa [#allocation3], 1 }

</bundles_post_ra>
